<compile_context>
chip_gen: v6e
topology: v6e:2x2x1
jax: 0.10.0
libtpu: 0.0.40
codegen_flags: <defaults>
</compile_context>

<pallas_src>
import jax
import jax.numpy as jnp
from jax.experimental import pallas as pl
from jax.experimental.pallas import tpu as pltpu


def _cce_tile_kernel(out_ref, tgt_ref, rowloss_ref):
    # One (TILE_N, C) block per grid step; cast once per tile (v5e has no
    # bf16 VPU/EUP, so all math is done in f32).
    x = out_ref[...].astype(jnp.float32)
    t = tgt_ref[...].astype(jnp.float32)

    # Fused log-softmax along the class (lane) axis.
    m = jnp.max(x, axis=-1, keepdims=True)                         # (T, 1) XLU
    xm = x - m                                                     # (T, C) VPU
    logz = jnp.log(jnp.sum(jnp.exp(xm), axis=-1, keepdims=True))   # (T, 1) EUP+XLU

    # -t * log_softmax = t * (logZ - xm); per-row reduction rides the XLU.
    rowloss_ref[...] = jnp.sum(t * (logz - xm), axis=-1, keepdims=True)


def _round_up(x, m):
    return ((x + m - 1) // m) * m


def _pick_tile_n(n, c, *, vmem_budget_bytes=24 * 1024 * 1024, max_tile=2048):
    # 2 inputs x 2 pipeline buffers x (tile_n * C * 4B) must fit in the budget.
    rows = vmem_budget_bytes // (2 * 2 * c * 4)
    rows = max(8, (rows // 8) * 8)
    rows = min(rows, max_tile)
    rows = min(rows, _round_up(n, 8))
    return int(rows)


def categorical_cross_entropy2(output, target, *, tile_n=None,
                               vmem_limit_bytes=32 * 1024 * 1024):
    """Pallas implementation of CategoricalCrossEntropy2.forward.

    output, target: (N, C) arrays (softmax over the last axis, i.e. PyTorch
    dim=1 for 2-D inputs). Returns a float32 scalar.
    """
    assert output.shape == target.shape and output.ndim == 2
    n, c = output.shape

    if tile_n is None:
        tile_n = _pick_tile_n(n, c)
    tile_n = max(8, (int(tile_n) // 8) * 8)

    n_pad = _round_up(max(n, tile_n), tile_n)
    if n_pad != n:
        # Zero-padded rows contribute exactly 0 (target rows are all zero),
        # and the final division uses the original N.
        pad = ((0, n_pad - n), (0, 0))
        output = jnp.pad(output, pad)
        target = jnp.pad(target, pad)
    num_tiles = n_pad // tile_n

    row_losses = pl.pallas_call(
        _cce_tile_kernel,
        out_shape=jax.ShapeDtypeStruct((n_pad, 1), jnp.float32),
        grid=(num_tiles,),
        in_specs=[
            pl.BlockSpec((tile_n, c), lambda i: (i, 0)),
            pl.BlockSpec((tile_n, c), lambda i: (i, 0)),
        ],
        out_specs=pl.BlockSpec((tile_n, 1), lambda i: (i, 0)),
        compiler_params=pltpu.CompilerParams(
            dimension_semantics=("parallel",),
            vmem_limit_bytes=vmem_limit_bytes,
        ),
    )(output, target)

    return jnp.sum(row_losses) / jnp.float32(n)


def _reference(output, target):
    logits = jax.nn.softmax(output.astype(jnp.float32), axis=1)
    return jnp.sum(-target.astype(jnp.float32) * jnp.log(logits)) / target.shape[0]


if __name__ == "__main__":
    key = jax.random.PRNGKey(0)
    k1, k2, k3, k4 = jax.random.split(key, 4)

    # Primary small test: batch=8, classes=128 (lane-aligned), single tile.
    N, C = 8, 128
    output = jax.random.normal(k1, (N, C), dtype=jnp.float32)
    target = jax.nn.softmax(jax.random.normal(k2, (N, C), dtype=jnp.float32), axis=1)

    loss = jax.block_until_ready(categorical_cross_entropy2(output, target))
    ref = jax.block_until_ready(_reference(output, target))
    assert jnp.allclose(loss, ref, rtol=1e-5, atol=1e-5), (loss, ref)

    # Multi-tile + padded-batch path: N not a multiple of the tile size.
    N2, C2 = 20, 256
    output2 = jax.random.normal(k3, (N2, C2), dtype=jnp.float32)
    target2 = jax.nn.softmax(jax.random.normal(k4, (N2, C2), dtype=jnp.float32), axis=1)

    loss2 = jax.block_until_ready(
        categorical_cross_entropy2(output2, target2, tile_n=8))
    ref2 = jax.block_until_ready(_reference(output2, target2))
    assert jnp.allclose(loss2, ref2, rtol=1e-5, atol=1e-5), (loss2, ref2)

    print("KERNEL_OK")
</pallas_src>

<mosaic_0001>
module attributes {stable_mosaic.version = 11 : i64} {
  func.func @_cce_tile_kernel(%arg0: i32, %arg1: memref<8x128xf32, #tpu.memory_space<vmem>>, %arg2: memref<8x128xf32, #tpu.memory_space<vmem>>, %arg3: memref<8x1xf32, #tpu.memory_space<vmem>>) attributes {dimension_semantics = [#tpu.dimension_semantics<parallel>], iteration_bounds = array<i64: 1>, scalar_prefetch = 0 : i64, scratch_operands = 0 : i64, tpu.core_type = #tpu.core_type<tc>, window_params = [{transform_indices = @transform_0, window_bounds = array<i64: 8, 128>}, {transform_indices = @transform_1, window_bounds = array<i64: 8, 128>}, {transform_indices = @transform_2, window_bounds = array<i64: 8, 1>}]} {
    %c0 = arith.constant 0 : index
    %c0_0 = arith.constant 0 : index
    %0 = vector.load %arg1[%c0, %c0_0] : memref<8x128xf32, #tpu.memory_space<vmem>>, vector<8x128xf32>
    %c0_1 = arith.constant 0 : index
    %c0_2 = arith.constant 0 : index
    %1 = vector.load %arg2[%c0_1, %c0_2] : memref<8x128xf32, #tpu.memory_space<vmem>>, vector<8x128xf32>
    %cst = arith.constant dense<0xFF800000> : vector<8xf32>
    %2 = vector.multi_reduction <maximumf>, %0, %cst [1] : vector<8x128xf32> to vector<8xf32>
    %3 = vector.shape_cast %2 : vector<8xf32> to vector<8x1xf32>
    %4 = vector.broadcast %3 : vector<8x1xf32> to vector<8x128xf32>
    %5 = arith.subf %0, %4 : vector<8x128xf32>
    %6 = math.exp %5 : vector<8x128xf32>
    %cst_3 = arith.constant dense<0.000000e+00> : vector<8xf32>
    %7 = vector.multi_reduction <add>, %6, %cst_3 [1] : vector<8x128xf32> to vector<8xf32>
    %8 = vector.shape_cast %7 : vector<8xf32> to vector<8x1xf32>
    %9 = math.log %8 : vector<8x1xf32>
    %10 = vector.broadcast %9 : vector<8x1xf32> to vector<8x128xf32>
    %11 = arith.subf %10, %5 : vector<8x128xf32>
    %12 = arith.mulf %1, %11 : vector<8x128xf32>
    %cst_4 = arith.constant dense<0.000000e+00> : vector<8xf32>
    %13 = vector.multi_reduction <add>, %12, %cst_4 [1] : vector<8x128xf32> to vector<8xf32>
    %14 = vector.shape_cast %13 : vector<8xf32> to vector<8x1xf32>
    %c0_5 = arith.constant 0 : index
    %c0_6 = arith.constant 0 : index
    %15 = vector.load %arg3[%c0_5, %c0_6] : memref<8x1xf32, #tpu.memory_space<vmem>>, vector<8x1xf32>
    tpu.vector_store %arg3[%c0_5, %c0_6], %14 {strides = array<i32>} : memref<8x1xf32, #tpu.memory_space<vmem>>, vector<8x1xf32>,
    return
  }
  func.func @transform_0(%arg0: i32) -> (i32, i32) {
    %c0_i32 = arith.constant 0 : i32
    %c0_i32_0 = arith.constant 0 : i32
    return %arg0, %c0_i32 : i32, i32
  }
  func.func @transform_1(%arg0: i32) -> (i32, i32) {
    %c0_i32 = arith.constant 0 : i32
    %c0_i32_0 = arith.constant 0 : i32
    return %arg0, %c0_i32 : i32, i32
  }
  func.func @transform_2(%arg0: i32) -> (i32, i32) {
    %c0_i32 = arith.constant 0 : i32
    %c0_i32_0 = arith.constant 0 : i32
    return %arg0, %c0_i32 : i32, i32
  }
}

</mosaic_0001>

<bundles_post_ra>
// kernel: tpu_custom_call.1
= control target key start
LH: loop header
LB: loop body
LE: loop exit
PB: predicated region body
PF: predicated region fallthrough
CT: control target
= control target key end

     0   :  { %7 = vsyncpa [#allocation3], 0  ;;  %s134_s0 = inlined_call_operand.hbm [shape: f32[8,128], index: 0, kind: input, shape index: {}]   ;;  %s135_s1 = inlined_call_operand.hbm [shape: f32[8,128], index: 1, kind: input, shape index: {}]   ;;  %s136_s2 = inlined_call_operand.vmem [shape: f32[8,1], index: 2, kind: output, shape index: {}]  }
   0x1   :  { %8 = vsyncpa [#allocation5], 0  ;;  %s108_s9 = smov [#allocation2]   ;;  %s109_s11 = smov [#allocation4]  }
   0x2   :  { %s15_s10 = sshll.u32 %s108_s9, 4  ;;  %s25_s12 = sshll.u32 %s109_s11, 4  ;;  %s16_s10 = int_to_ptr.vmem [resolvable:$true] %s15_s10  ;;  %s26_s12 = int_to_ptr.vmem [resolvable:$true] %s25_s12 }
   0x3   :  { %s72_s13 = scalar_lea.vmem %s16_s10, 128  ;;  %p77_p1 = scmp.lt.s32.totalorder %s16_s10, %s16_s10 }
   0x4   :  { %p73_p0 = scmp.ne.s32.totalorder %s16_s10, %s72_s13  ;;  %p78_p2 = scmp.lt.s32.totalorder %s72_s13, %s72_s13 }
   0x6   :  { %p79_p3 = por %p78_p2, %p77_p1 }
   0x8   :  { %p80_p4 = pnand %p79_p3, %p73_p0 }
   0xa   :  { %83 = shalt.err (!%p80_p4)
}
   0xb   :  { %18 = dma.hbm_to_vmem [thread:$0]  %s134_s0, 128, %s16_s10, [#allocation3]  }
   0xc   :  { %s92_s16 = scalar_lea.vmem %s26_s12, 128  ;;  %p97_p6 = scmp.lt.s32.totalorder %s26_s12, %s26_s12 }
   0xd   :  { %p93_p5 = scmp.ne.s32.totalorder %s26_s12, %s92_s16  ;;  %p98_p7 = scmp.lt.s32.totalorder %s92_s16, %s92_s16 }
   0xf   :  { %p99_p8 = por %p98_p7, %p97_p6 }
  0x11   :  { %p100_p9 = pnand %p99_p8, %p93_p5 }
  0x13   :  { %103 = shalt.err (!%p100_p9)
}
  0x14   :  { %28 = dma.hbm_to_vmem [thread:$0]  %s135_s1, 128, %s26_s12, [#allocation5]  }
  0x15   :  { %104 = dma.done.wait [#allocation3], 128  }
  0x16   :  { %105 = vsyncadd [#allocation3], 4294967168 }
  0x17   :  { %106 = dma.done.wait [#allocation5], 128  }
  0x18   :  { %107 = vsyncadd [#allocation5], 4294967168  ;;  %v35_v0 = vld [vmem:[#allocation2] sm:$0xff]  ;;  %v36_v8 = vld [vmem:[#allocation4] sm:$0xff]  ;;  %vm50_vm0 = vcmask 7168  }
  0x19   :  { %37 = vmax.xlane.f32.xlu0 %v35_v0 }
  0xa2   :  { %v38_v1 = vpop.xlane.xlu0 %37 }
  0xa3   :  { %v39_v2 = vsub.f32 %v35_v0, %v38_v1 }
  0xa5   :  { %v40_v3 = vmul.f32 1.442695, %v39_v2 }
  0xa7   :  { %60 = vpow2.f32 %v40_v3 }
  0xb4   :  { %v61_v4 = vpop.eup %60 }
  0xb5   :  { %42 = vadd.xlane.f32.xlu0 %v61_v4 }
 0x13e   :  { %v43_v5 = vpop.xlane.xlu0 %42 }
 0x13f   :  { %62 = vlog2.f32 %v43_v5 }
 0x14c   :  { %v63_v6 = vpop.eup %62 }
 0x14d   :  { %v45_v7 = vmul.f32 0.6931472, %v63_v6 }
 0x14f   :  { %v46_v9 = vsub.f32 %v45_v7, %v39_v2 }
 0x151   :  { %v47_v10 = vmul.f32 %v46_v9, %v36_v8 }
 0x153   :  { %48 = vadd.xlane.f32.xlu1 %v47_v10 }
 0x1dc   :  { %v49_v11 = vpop.xlane.xlu1 %48 }
 0x1dd   :  { %51 = vst.msk [vmem:[%s136_s2] sm:$0xff] %vm50_vm0, %v49_v11 }
 0x1de   :  { %56 = vsyncpa [#allocation3], 1 }
 0x1df   :  { %57 = vsyncpa [#allocation5], 1 }

</bundles_post_ra>
